<compile_context>
chip_gen: v6e
topology: v6e:2x2x1
jax: 0.10.0
libtpu: 0.0.40
codegen_flags: <defaults>
</compile_context>

<pallas_src>
import functools

import jax
import jax.numpy as jnp
from jax.experimental import pallas as pl
from jax.experimental.pallas import tpu as pltpu


def _make_focal_kernel(gamma, alpha, n_valid, tile_cols, blocks_per_core):
    gamma = float(gamma)
    alpha = float(alpha)
    gamma_int = int(gamma) if gamma.is_integer() and gamma >= 0 else None

    def focal_kernel(logits_ref, targets_ref, out_ref, acc_ref):
        core = pl.program_id(0)          # parallel axis (megacore shard)
        i = pl.program_id(1)             # reduction axis over column tiles

        @pl.when(i == 0)
        def _():
            acc_ref[...] = jnp.zeros_like(acc_ref)

        x = logits_ref[...]              # (C, TN) float32, anchors on lanes
        t = targets_ref[...]             # (1, TN) int32

        # Class index lives on the sublane (row) axis; targets broadcast over it.
        class_range = jax.lax.broadcasted_iota(jnp.int32, x.shape, 0)
        match = t == class_range         # (C, TN) bool

        # Numerically stable log(sigmoid(x)) / log(1 - sigmoid(x)):
        #   e  = exp(-|x|),  sp = log1p(e) = softplus(-|x|)
        #   log p     = -sp        (x >= 0)    |  x - sp     (x < 0)
        #   log(1-p)  = -x - sp    (x >= 0)    |  -sp        (x < 0)
        pos = x >= 0
        e = jnp.exp(-jnp.abs(x))                         # 1 transcendental
        sp = jnp.log1p(e)                                # 1 transcendental
        log_p = jnp.where(pos, -sp, x - sp)
        log_1mp = jnp.where(pos, -x - sp, -sp)
        p = jnp.where(pos, 1.0, e) / (1.0 + e)           # sigmoid(x)
        one_m_p = 1.0 - p

        # Modulating factors: integer gamma -> repeated VPU multiplies (no EUP).
        if gamma_int is not None:
            mod1 = jnp.ones_like(x)
            mod2 = jnp.ones_like(x)
            for _ in range(gamma_int):
                mod1 = mod1 * one_m_p
                mod2 = mod2 * p
        else:
            mod1 = one_m_p ** gamma
            mod2 = p ** gamma

        term1 = mod1 * log_p             # matched-class term
        term2 = mod2 * log_1mp           # non-matched-class term

        # Select instead of mask * term: avoids 0 * (-inf) = NaN and extra casts.
        per_elem = jnp.where(match, (-alpha) * term1, (alpha - 1.0) * term2)

        # Mask out padded (out-of-range) anchor columns.
        col = ((core * blocks_per_core + i) * tile_cols
               + jax.lax.broadcasted_iota(jnp.int32, x.shape, 1))
        per_elem = jnp.where(col < n_valid, per_elem, 0.0)

        # Pure VPU accumulation each step; defer the cross-lane reduce.
        acc_ref[...] += per_elem

        @pl.when(i == pl.num_programs(1) - 1)
        def _():
            out_ref[...] = jnp.sum(acc_ref[...]).reshape(1, 1, 1)

    return focal_kernel


@functools.partial(jax.jit, static_argnames=("gamma", "alpha", "tile_cols",
                                             "num_cores"))
def sigmoid_focal_loss_sum(logits, targets, gamma, alpha, *,
                           tile_cols=512, num_cores=2):
    """Sum of the sigmoid focal loss over all (anchor, class) entries."""
    N, C = logits.shape

    # Lane-dense layout: classes on sublanes, anchors on lanes.
    logits_t = jnp.asarray(logits, jnp.float32).T            # (C, N)
    targets_row = targets.astype(jnp.int32).reshape(1, N)    # (1, N)

    blocks_per_core = pl.cdiv(N, num_cores * tile_cols)
    n_pad = num_cores * blocks_per_core * tile_cols
    if n_pad != N:
        logits_t = jnp.pad(logits_t, ((0, 0), (0, n_pad - N)))
        targets_row = jnp.pad(targets_row, ((0, 0), (0, n_pad - N)),
                              constant_values=-1)

    kernel = _make_focal_kernel(gamma, alpha, N, tile_cols, blocks_per_core)

    out = pl.pallas_call(
        kernel,
        out_shape=jax.ShapeDtypeStruct((num_cores, 1, 1), jnp.float32),
        grid_spec=pltpu.PrefetchScalarGridSpec(
            num_scalar_prefetch=0,
            grid=(num_cores, blocks_per_core),
            in_specs=[
                # logits tile: full class dim x lane-dense anchor tile
                pl.BlockSpec((C, tile_cols),
                             lambda p, i: (0, p * blocks_per_core + i)),
                # targets tile: single lane-dense row
                pl.BlockSpec((1, tile_cols),
                             lambda p, i: (0, p * blocks_per_core + i)),
            ],
            # one scalar partial per core; summed in the wrapper
            out_specs=pl.BlockSpec((1, 1, 1), lambda p, i: (p, 0, 0)),
            scratch_shapes=[pltpu.VMEM((C, tile_cols), jnp.float32)],
        ),
        compiler_params=pltpu.CompilerParams(
            dimension_semantics=("parallel", "arbitrary"),
        ),
    )(logits_t, targets_row)

    return jnp.sum(out).astype(logits.dtype)


class SigmoidFocalLoss:
    """JAX/Pallas equivalent of the PyTorch SigmoidFocalLoss module."""

    def __init__(self, gamma, alpha):
        self.gamma = float(gamma[0] if hasattr(gamma, "__getitem__") else gamma)
        self.alpha = float(alpha[0] if hasattr(alpha, "__getitem__") else alpha)

    def __call__(self, logits, targets, **kwargs):
        return sigmoid_focal_loss_sum(logits, targets, self.gamma, self.alpha)


def _reference(logits, targets, gamma, alpha):
    """Pure-JAX reference mirroring the PyTorch implementation."""
    N, C = logits.shape
    class_range = jnp.arange(0, C, dtype=jnp.int32)[None, :]
    t = targets.astype(jnp.int32)[:, None]
    p = jax.nn.sigmoid(logits.astype(jnp.float32))
    term1 = (1 - p) ** gamma * jnp.log(p)
    term2 = p ** gamma * jnp.log(1 - p)
    loss = (-(t == class_range).astype(jnp.float32) * term1 * alpha
            - (t != class_range).astype(jnp.float32) * term2 * (1 - alpha))
    return jnp.sum(loss)


if __name__ == "__main__":
    key = jax.random.PRNGKey(0)
    k1, k2 = jax.random.split(key)

    N, C = 64, 8                       # small: 64 anchors, 8 classes
    gamma, alpha = 2.0, 0.25

    logits = jax.random.normal(k1, (N, C), dtype=jnp.float32)
    targets = jax.random.randint(k2, (N,), 0, C, dtype=jnp.int32)

    module = SigmoidFocalLoss(gamma, alpha)
    out = module(logits, targets)
    out = jax.block_until_ready(out)

    ref = _reference(logits, targets, gamma, alpha)
    assert jnp.allclose(out, ref, rtol=1e-4, atol=1e-4), (out, ref)

    print("KERNEL_OK")
</pallas_src>

<mosaic_0001>
module attributes {stable_mosaic.version = 11 : i64} {
  func.func @focal_kernel(%arg0: i32, %arg1: i32, %arg2: memref<8x512xf32, #tpu.memory_space<vmem>>, %arg3: memref<1x512xi32, #tpu.memory_space<vmem>>, %arg4: memref<1x1x1xf32, #tpu.memory_space<vmem>>, %arg5: memref<8x512xf32, #tpu.memory_space<vmem>>) attributes {dimension_semantics = [#tpu.dimension_semantics<parallel>, #tpu.dimension_semantics<arbitrary>], iteration_bounds = array<i64: 2, 1>, scalar_prefetch = 0 : i64, scratch_operands = 1 : i64, tpu.core_type = #tpu.core_type<tc>, window_params = [{transform_indices = @transform_0, window_bounds = array<i64: 8, 512>}, {transform_indices = @transform_1, window_bounds = array<i64: 1, 512>}, {transform_indices = @transform_2, window_bounds = array<i64: 1, 1, 1>}]} {
    %c0_i32 = arith.constant 0 : i32
    %0 = arith.cmpi eq, %arg1, %c0_i32 : i32
    %1 = arith.extui %0 : i1 to i32
    %c0_i32_0 = arith.constant 0 : i32
    %2 = arith.cmpi ne, %1, %c0_i32_0 : i32
    scf.if %2 {
      %cst_22 = arith.constant 0.000000e+00 : f32
      %61 = vector.broadcast %cst_22 : f32 to vector<8x512xf32>
      %c0_23 = arith.constant 0 : index
      %c0_24 = arith.constant 0 : index
      %62 = vector.load %arg5[%c0_23, %c0_24] : memref<8x512xf32, #tpu.memory_space<vmem>>, vector<8x512xf32>
      tpu.vector_store %arg5[%c0_23, %c0_24], %61 {strides = array<i32>} : memref<8x512xf32, #tpu.memory_space<vmem>>, vector<8x512xf32>,
    } else {
    }
    %c0 = arith.constant 0 : index
    %c0_1 = arith.constant 0 : index
    %3 = vector.load %arg2[%c0, %c0_1] : memref<8x512xf32, #tpu.memory_space<vmem>>, vector<8x512xf32>
    %c0_2 = arith.constant 0 : index
    %c0_3 = arith.constant 0 : index
    %4 = vector.load %arg3[%c0_2, %c0_3] : memref<1x512xi32, #tpu.memory_space<vmem>>, vector<1x512xi32>
    %5 = tpu.iota {dimensions = array<i32: 0>} : vector<8x512xi32>
    %6 = vector.broadcast %4 : vector<1x512xi32> to vector<8x512xi32>
    %7 = arith.cmpi eq, %6, %5 : vector<8x512xi32>
    %cst = arith.constant 0.000000e+00 : f32
    %8 = vector.broadcast %cst : f32 to vector<8x512xf32>
    %9 = arith.cmpf oge, %3, %8 : vector<8x512xf32>
    %10 = math.absf %3 : vector<8x512xf32>
    %cst_4 = arith.constant 0.000000e+00 : f32
    %11 = vector.broadcast %cst_4 : f32 to vector<8x512xf32>
    %12 = arith.subf %11, %10 : vector<8x512xf32>
    %13 = math.exp %12 : vector<8x512xf32>
    %14 = math.log1p %13 : vector<8x512xf32>
    %cst_5 = arith.constant 0.000000e+00 : f32
    %15 = vector.broadcast %cst_5 : f32 to vector<8x512xf32>
    %16 = arith.subf %15, %14 : vector<8x512xf32>
    %17 = arith.subf %3, %14 : vector<8x512xf32>
    %18 = arith.select %9, %16, %17 : vector<8x512xi1>, vector<8x512xf32>
    %cst_6 = arith.constant 0.000000e+00 : f32
    %19 = vector.broadcast %cst_6 : f32 to vector<8x512xf32>
    %20 = arith.subf %19, %3 : vector<8x512xf32>
    %21 = arith.subf %20, %14 : vector<8x512xf32>
    %cst_7 = arith.constant 0.000000e+00 : f32
    %22 = vector.broadcast %cst_7 : f32 to vector<8x512xf32>
    %23 = arith.subf %22, %14 : vector<8x512xf32>
    %24 = arith.select %9, %21, %23 : vector<8x512xi1>, vector<8x512xf32>
    %cst_8 = arith.constant 1.000000e+00 : f32
    %25 = vector.broadcast %cst_8 : f32 to vector<8x512xf32>
    %26 = arith.select %9, %25, %13 : vector<8x512xi1>, vector<8x512xf32>
    %cst_9 = arith.constant 1.000000e+00 : f32
    %27 = vector.broadcast %cst_9 : f32 to vector<8x512xf32>
    %28 = arith.addf %27, %13 : vector<8x512xf32>
    %29 = arith.divf %26, %28 : vector<8x512xf32>
    %cst_10 = arith.constant 1.000000e+00 : f32
    %30 = vector.broadcast %cst_10 : f32 to vector<8x512xf32>
    %31 = arith.subf %30, %29 : vector<8x512xf32>
    %cst_11 = arith.constant 1.000000e+00 : f32
    %32 = vector.broadcast %cst_11 : f32 to vector<8x512xf32>
    %cst_12 = arith.constant 1.000000e+00 : f32
    %33 = vector.broadcast %cst_12 : f32 to vector<8x512xf32>
    %34 = arith.mulf %32, %31 : vector<8x512xf32>
    %35 = arith.mulf %33, %29 : vector<8x512xf32>
    %36 = arith.mulf %34, %31 : vector<8x512xf32>
    %37 = arith.mulf %35, %29 : vector<8x512xf32>
    %38 = arith.mulf %36, %18 : vector<8x512xf32>
    %39 = arith.mulf %37, %24 : vector<8x512xf32>
    %cst_13 = arith.constant -2.500000e-01 : f32
    %40 = vector.broadcast %cst_13 : f32 to vector<8x512xf32>
    %41 = arith.mulf %40, %38 : vector<8x512xf32>
    %cst_14 = arith.constant -7.500000e-01 : f32
    %42 = vector.broadcast %cst_14 : f32 to vector<8x512xf32>
    %43 = arith.mulf %42, %39 : vector<8x512xf32>
    %44 = arith.select %7, %41, %43 : vector<8x512xi1>, vector<8x512xf32>
    %c1_i32 = arith.constant 1 : i32
    %45 = arith.muli %arg0, %c1_i32 : i32
    %46 = arith.addi %45, %arg1 : i32
    %c512_i32 = arith.constant 512 : i32
    %47 = arith.muli %46, %c512_i32 : i32
    %48 = tpu.iota {dimensions = array<i32: 1>} : vector<8x512xi32>
    %49 = vector.broadcast %47 : i32 to vector<8x512xi32>
    %50 = arith.addi %49, %48 : vector<8x512xi32>
    %c64_i32 = arith.constant 64 : i32
    %51 = vector.broadcast %c64_i32 : i32 to vector<8x512xi32>
    %52 = arith.cmpi slt, %50, %51 : vector<8x512xi32>
    %cst_15 = arith.constant 0.000000e+00 : f32
    %53 = vector.broadcast %cst_15 : f32 to vector<8x512xf32>
    %54 = arith.select %52, %44, %53 : vector<8x512xi1>, vector<8x512xf32>
    %c0_16 = arith.constant 0 : index
    %c0_17 = arith.constant 0 : index
    %55 = vector.load %arg5[%c0_16, %c0_17] : memref<8x512xf32, #tpu.memory_space<vmem>>, vector<8x512xf32>
    %56 = arith.addf %55, %54 : vector<8x512xf32>
    %c0_18 = arith.constant 0 : index
    %c0_19 = arith.constant 0 : index
    %57 = vector.load %arg5[%c0_18, %c0_19] : memref<8x512xf32, #tpu.memory_space<vmem>>, vector<8x512xf32>
    tpu.vector_store %arg5[%c0_18, %c0_19], %56 {strides = array<i32>} : memref<8x512xf32, #tpu.memory_space<vmem>>, vector<8x512xf32>,
    %c0_i32_20 = arith.constant 0 : i32
    %58 = arith.cmpi eq, %arg1, %c0_i32_20 : i32
    %59 = arith.extui %58 : i1 to i32
    %c0_i32_21 = arith.constant 0 : i32
    %60 = arith.cmpi ne, %59, %c0_i32_21 : i32
    scf.if %60 {
      %c0_22 = arith.constant 0 : index
      %c0_23 = arith.constant 0 : index
      %61 = vector.load %arg5[%c0_22, %c0_23] : memref<8x512xf32, #tpu.memory_space<vmem>>, vector<8x512xf32>
      %62 = vector.shape_cast %61 : vector<8x512xf32> to vector<1x8x512xf32>
      %cst_24 = arith.constant dense<0.000000e+00> : vector<1xf32>
      %63 = vector.multi_reduction <add>, %62, %cst_24 [1, 2] : vector<1x8x512xf32> to vector<1xf32>
      %64 = vector.shape_cast %63 : vector<1xf32> to vector<1x1x1xf32>
      %65 = vector.extract %64[0, 0, 0] : f32 from vector<1x1x1xf32>
      %66 = vector.broadcast %65 : f32 to vector<1x1x1xf32>
      %c0_25 = arith.constant 0 : index
      %c0_26 = arith.constant 0 : index
      %c0_27 = arith.constant 0 : index
      %67 = vector.load %arg4[%c0_25, %c0_26, %c0_27] : memref<1x1x1xf32, #tpu.memory_space<vmem>>, vector<1x1x1xf32>
      tpu.vector_store %arg4[%c0_25, %c0_26, %c0_27], %66 {strides = array<i32>} : memref<1x1x1xf32, #tpu.memory_space<vmem>>, vector<1x1x1xf32>,
    } else {
    }
    return
  }
  func.func @transform_0(%arg0: i32, %arg1: i32) -> (i32, i32) {
    %c1_i32 = arith.constant 1 : i32
    %0 = arith.muli %arg0, %c1_i32 : i32
    %1 = arith.addi %0, %arg1 : i32
    %c0_i32 = arith.constant 0 : i32
    %c0_i32_0 = arith.constant 0 : i32
    return %c0_i32, %1 : i32, i32
  }
  func.func @transform_1(%arg0: i32, %arg1: i32) -> (i32, i32) {
    %c1_i32 = arith.constant 1 : i32
    %0 = arith.muli %arg0, %c1_i32 : i32
    %1 = arith.addi %0, %arg1 : i32
    %c0_i32 = arith.constant 0 : i32
    %c0_i32_0 = arith.constant 0 : i32
    return %c0_i32, %1 : i32, i32
  }
  func.func @transform_2(%arg0: i32, %arg1: i32) -> (i32, i32, i32) {
    %c0_i32 = arith.constant 0 : i32
    %c0_i32_0 = arith.constant 0 : i32
    %c0_i32_1 = arith.constant 0 : i32
    return %arg0, %c0_i32, %c0_i32_0 : i32, i32, i32
  }
}

</mosaic_0001>

<bundles_post_ra>
// kernel: sigmoid_focal_loss_sum.1
= control target key start
LH: loop header
LB: loop body
LE: loop exit
PB: predicated region body
PF: predicated region fallthrough
CT: control target
= control target key end

     0   :  { %s568_s9 = smov 0   ;;  %s570_s10 = smov 0   ;;  %s742_s0 = inlined_call_operand.vmem [shape: f32[8,1024], index: 0, kind: input, shape index: {}]   ;;  %s743_s1 = inlined_call_operand.vmem [shape: s32[1,1024], index: 1, kind: input, shape index: {}]   ;;  %s744_s2 = inlined_call_operand.vmem [shape: f32[2,1,1], index: 2, kind: output, shape index: {}]  }
   0x1   :  { %s572_s11 = smov 0  }
   0x2 LB: > { %s24_s12 = sadd.s32 1, %s547_s10  ;;  %p472_p0 = scmp.ge.s32.totalorder %s551_s11, 1  ;;  %s551_s11 = sphi %s572_s11, %s12_s11   ;;  %s547_s10 = sphi %s570_s10, %s748_s10   ;;  %s543_s9 = sphi %s568_s9, %s747_s9  }
   0x3   : > { %p26_p1 = scmp.ge.s32.totalorder %s24_s12, 2  ;;  %p143_p2 = scmp.lt.s32.totalorder %s551_s11, 3 }
   0x5   : > { %s750_s12 = smov (%p26_p1, %s24_s12), 0  ;;  %p144_p3 = pnand %p472_p0, %p143_p2 }
   0x6   : > { %s473_s13 = sshll.u32 (!%p144_p3), %s543_s9, 2  ;;  %s476_s18 = sshll.u32 (!%p144_p3), %s543_s9, 9 }
   0x7   : > { %147 = sbr.rel (%p144_p3) target bundleno = 280 (0x118), region = 28  ;;  %p171_p4 = scmp.lt.s32.totalorder (!%p144_p3), %s473_s13, 7 }
   0x8   : > { %p184_p5 = scmp.lt.s32.totalorder (!%p144_p3), %s543_s9, 1 }
   0xc   : > { %s752_s13 = smov (!%p171_p4, %s473_s13), 7  ;;  %v200_v16 = vlaneseq  ;;  %v357_v29 = vstv %s476_s18  ;;  %s754_s9 = smov (!%p184_p5, %s543_s9), 1 }
   0xd   : > { %s474_s14 = sshll.u32 %s752_s13, 3  ;;  %s181_s21 = scalar_lea.vmem %s743_s1, %s752_s13 }
   0xe   : > { %s174_s17 = scalar_lea.vmem %s742_s0, %s474_s14  ;;  %v612_v20 = vshrl.u32 %v200_v16, 7  ;;  %v353_v25 = vand.u32 127, %v200_v16  ;;  %v199_v30 = vld [vmem:[%s181_s21] sm:$0xf]  ;;  %s186_s24 = scalar_lea.vmem %s744_s2, %s754_s9 }
   0xf   : > { %v595_v0 = vld [vmem:[%s174_s17] sm:$0xff]  ;;  %v597_v1 = vld [vmem:[%s174_s17 + $0x8] sm:$0xff]  ;;  %v599_v2 = vld [vmem:[%s174_s17 + $0x10] sm:$0xff] }
  0x10   : > { %v601_v3 = vld [vmem:[%s174_s17 + $0x18] sm:$0xff]  ;;  %v226_v4 = vand.u32 2147483647, %v595_v0  ;;  %v227_v5 = vand.u32 2147483647, %v597_v1  ;;  %v204_v27 = vsub.s32 0, %v612_v20  ;;  %v632_v38 = vadd.s32 %v357_v29, %v353_v25 }
  0x11   : > { %v228_v6 = vand.u32 2147483647, %v599_v2  ;;  %v229_v8 = vand.u32 2147483647, %v601_v3  ;;  %v208_v28 = vsub.s32 1, %v612_v20  ;;  %v212_v31 = vsub.s32 2, %v612_v20 }
  0x12   : > { %v230_v7 = vsub.f32 0.0, %v226_v4  ;;  %v231_v9 = vsub.f32 0.0, %v227_v5  ;;  %v216_v33 = vsub.s32 3, %v612_v20  ;;  %v354_v34 = vadd.s32 128, %v353_v25 }
  0x13   : > { %v232_v10 = vsub.f32 0.0, %v228_v6  ;;  %v233_v12 = vsub.f32 0.0, %v229_v8  ;;  %v355_v35 = vadd.s32 256, %v353_v25  ;;  %v356_v37 = vadd.s32 384, %v353_v25 }
  0x14   : > { %v234_v11 = vmul.f32 1.442695, %v230_v7  ;;  %v236_v13 = vmul.f32 1.442695, %v231_v9  ;;  %v634_v39 = vrot.slane %v199_v30, %v204_v27  ;;  %v636_v40 = vrot.slane %v199_v30, %v208_v28 }
  0x15   : > { %v238_v14 = vmul.f32 1.442695, %v232_v10  ;;  %v240_v15 = vmul.f32 1.442695, %v233_v12  ;;  %v639_v42 = vrot.slane %v199_v30, %v212_v31  ;;  %v642_v45 = vrot.slane %v199_v30, %v216_v33 }
  0x16   : > { %505 = vpow2.f32 %v234_v11  ;;  %vm222_vm0 = vcmp.ge.f32.partialorder %v595_v0, 0.0  ;;  %vm223_vm1 = vcmp.ge.f32.partialorder %v597_v1, 0.0  ;;  %vm224_vm2 = vcmp.ge.f32.partialorder %v599_v2, 0.0 }
  0x17   : > { %507 = vpow2.f32 %v236_v13  ;;  %vm225_vm3 = vcmp.ge.f32.partialorder %v601_v3, 0.0  ;;  %v290_v51 = vsub.f32 0.0, %v595_v0  ;;  %v291_v54 = vsub.f32 0.0, %v597_v1 }
  0x18   : > { %509 = vpow2.f32 %v238_v14  ;;  %v292_v55 = vsub.f32 0.0, %v599_v2  ;;  %v293_v58 = vsub.f32 0.0, %v601_v3  ;;  %v657_v59 = vadd.s32 %v357_v29, %v354_v34 }
  0x19   : > { %511 = vpow2.f32 %v240_v15  ;;  %v660_v62 = vadd.s32 %v357_v29, %v355_v35  ;;  %v662_v63 = vadd.s32 %v357_v29, %v356_v37  ;;  %vm218_vm8 = vcmp.eq.s32.totalorder %v634_v39, %v612_v20 }
  0x1a   : > { %vm219_vm9 = vcmp.eq.s32.totalorder %v636_v40, %v612_v20  ;;  %vm220_vm10 = vcmp.eq.s32.totalorder %v639_v42, %v612_v20  ;;  %vm221_vm11 = vcmp.eq.s32.totalorder %v642_v45, %v612_v20  ;;  %vm362_vm12 = vcmp.lt.s32.totalorder %v632_v38, 64 }
  0x1b   : > { %vm363_vm13 = vcmp.lt.s32.totalorder %v657_v59, 64  ;;  %vm364_vm14 = vcmp.lt.s32.totalorder %v660_v62, 64  ;;  %vm365_vm15 = vcmp.lt.s32.totalorder %v662_v63, 64 }
  0x23   : > { %v607_v17 = vpop.eup %505 }
  0x24   : > { %v242_v18 = vadd.f32 1.0, %v607_v17  ;;  %v610_v19 = vpop.eup %507  ;;  %v245_v32 = vmul.f32 -0.5, %v607_v17  ;;  %v248_v46 = vand.u32 2147483647, %v607_v17  ;;  %v302_v7 = vsel %vm222_vm0, 1.0, %v607_v17 }
  0x25   : > { %v614_v21 = vpop.eup %509  ;;  %v251_v22 = vadd.f32 1.0, %v610_v19  ;;  %v254_v36 = vmul.f32 -0.5, %v610_v19  ;;  %v257_v48 = vand.u32 2147483647, %v610_v19  ;;  %v303_v12 = vsel %vm223_vm1, 1.0, %v610_v19 }
  0x26   : > { %513 = vlog2.f32 %v242_v18  ;;  %v618_v23 = vpop.eup %511  ;;  %v260_v24 = vadd.f32 1.0, %v614_v21  ;;  %v263_v41 = vmul.f32 -0.5, %v614_v21  ;;  %v246_v43 = vadd.f32 1.0, %v245_v32 }
  0x27   : > { %515 = vlog2.f32 %v251_v22  ;;  %v269_v26 = vadd.f32 1.0, %v618_v23  ;;  %v272_v44 = vmul.f32 -0.5, %v618_v23  ;;  %v255_v47 = vadd.f32 1.0, %v254_v36 }
  0x28   : > { %517 = vlog2.f32 %v260_v24  ;;  %v264_v49 = vadd.f32 1.0, %v263_v41  ;;  %v266_v50 = vand.u32 2147483647, %v614_v21  ;;  %v247_v52 = vmul.f32 %v607_v17, %v246_v43 }
  0x29   : > { %519 = vlog2.f32 %v269_v26  ;;  %v273_v53 = vadd.f32 1.0, %v272_v44  ;;  %vm249_vm4 = vcmp.lt.f32.partialorder %v248_v46, 0.0004427343  ;;  %v275_v57 = vand.u32 2147483647, %v618_v23 }
  0x2a   : > { %521 = vrcp.f32 %v242_v18  ;;  %v256_v61 = vmul.f32 %v610_v19, %v255_v47  ;;  %vm258_vm5 = vcmp.lt.f32.partialorder %v257_v48, 0.0004427343  ;;  %v265_v5 = vmul.f32 %v614_v21, %v264_v49 }
  0x2b   : > { %523 = vrcp.f32 %v251_v22  ;;  %vm665_vm6 = vcmp.lt.f32.partialorder %v266_v50, 0.0004427343  ;;  %v274_v11 = vmul.f32 %v618_v23, %v273_v53  ;;  %vm276_vm7 = vcmp.lt.f32.partialorder %v275_v57, 0.0004427343 }
  0x2c   : > { %525 = vrcp.f32 %v260_v24  ;;  %v304_v17 = vsel %vm224_vm2, 1.0, %v614_v21  ;;  %v305_v28 = vsel %vm225_vm3, 1.0, %v618_v23 }
  0x2d   : > { %527 = vrcp.f32 %v269_v26 }
  0x33   : > { %v514_v56 = vpop.eup %513 }
  0x34   : > { %v244_v60 = vmul.f32 0.6931472, %v514_v56  ;;  %v516_v4 = vpop.eup %515 }
  0x35   : > { %v518_v8 = vpop.eup %517  ;;  %v253_v10 = vmul.f32 0.6931472, %v516_v4 }
  0x36   : > { %v250_v9 = vsel %vm249_vm4, %v247_v52, %v244_v60  ;;  %v520_v13 = vpop.eup %519  ;;  %v262_v14 = vmul.f32 0.6931472, %v518_v8 }
  0x37   : > { %v278_v15 = vsub.f32 0.0, %v250_v9  ;;  %v282_v16 = vsub.f32 %v595_v0, %v250_v9  ;;  %v259_v18 = vsel %vm258_vm5, %v256_v61, %v253_v10  ;;  %v271_v22 = vmul.f32 0.6931472, %v520_v13  ;;  %v522_v25 = vpop.eup %521 }
  0x38   : > { %v294_v24 = vsub.f32 %v290_v51, %v250_v9  ;;  %v268_v26 = vsel %vm665_vm6, %v265_v5, %v262_v14  ;;  %v279_v27 = vsub.f32 0.0, %v259_v18  ;;  %v283_v19 = vsub.f32 %v597_v1, %v259_v18  ;;  %v524_v29 = vpop.eup %523 }
  0x39   : > { %v277_v30 = vsel %vm276_vm7, %v274_v11, %v271_v22  ;;  %v280_v31 = vsub.f32 0.0, %v268_v26  ;;  %v284_v32 = vsub.f32 %v599_v2, %v268_v26  ;;  %v295_v33 = vsub.f32 %v291_v54, %v259_v18  ;;  %v526_v34 = vpop.eup %525 }
  0x3a   : > { %v281_v35 = vsub.f32 0.0, %v277_v30  ;;  %v285_v21 = vsub.f32 %v601_v3, %v277_v30  ;;  %v286_v36 = vsel %vm222_vm0, %v278_v15, %v282_v16  ;;  %v296_v37 = vsub.f32 %v292_v55, %v268_v26  ;;  %v528_v41 = vpop.eup %527 }
  0x3b   : > { %v287_v23 = vsel %vm223_vm1, %v279_v27, %v283_v19  ;;  %v288_v43 = vsel %vm224_vm2, %v280_v31, %v284_v32  ;;  %v297_v44 = vsub.f32 %v293_v58, %v277_v30  ;;  %v298_v46 = vsel %vm222_vm0, %v294_v24, %v278_v15 }
  0x3c   : > { %v289_v47 = vsel %vm225_vm3, %v281_v35, %v285_v21  ;;  %v299_v48 = vsel %vm223_vm1, %v295_v33, %v279_v27  ;;  %v311_v49 = vmul.f32 %v522_v25, %v302_v7  ;;  %v313_v50 = vmul.f32 %v524_v29, %v303_v12 }
  0x3d   : > { %v300_v51 = vsel %vm224_vm2, %v296_v37, %v280_v31  ;;  %v301_v0 = vsel %vm225_vm3, %v297_v44, %v281_v35  ;;  %v315_v52 = vmul.f32 %v526_v34, %v304_v17  ;;  %v317_v53 = vmul.f32 %v528_v41, %v305_v28 }
  0x3e   : > { %v318_v54 = vsub.f32 1.0, %v311_v49  ;;  %v319_v55 = vsub.f32 1.0, %v313_v50  ;;  %v326_v56 = vmul.f32 %v311_v49, %v311_v49  ;;  %v327_v57 = vmul.f32 %v313_v50, %v313_v50 }
  0x3f   : > { %v320_v58 = vsub.f32 1.0, %v315_v52  ;;  %v321_v60 = vsub.f32 1.0, %v317_v53  ;;  %v328_v61 = vmul.f32 %v315_v52, %v315_v52  ;;  %v329_v4 = vmul.f32 %v317_v53, %v317_v53 }
  0x40   : > { %v322_v1 = vmul.f32 %v318_v54, %v318_v54  ;;  %v323_v5 = vmul.f32 %v319_v55, %v319_v55  ;;  %v334_v6 = vmul.f32 %v326_v56, %v298_v46  ;;  %v335_v7 = vmul.f32 %v327_v57, %v299_v48 }
  0x41   : > { %v324_v8 = vmul.f32 %v320_v58, %v320_v58  ;;  %v325_v2 = vmul.f32 %v321_v60, %v321_v60  ;;  %v336_v9 = vmul.f32 %v328_v61, %v300_v51  ;;  %v337_v10 = vmul.f32 %v329_v4, %v301_v0 }
  0x42   : > { %v330_v3 = vmul.f32 %v322_v1, %v286_v36  ;;  %v331_v11 = vmul.f32 %v323_v5, %v287_v23  ;;  %v342_v12 = vmul.f32 -0.75, %v334_v6  ;;  %v343_v13 = vmul.f32 -0.75, %v335_v7 }
  0x43   : > { %v332_v14 = vmul.f32 %v324_v8, %v288_v43  ;;  %v333_v15 = vmul.f32 %v325_v2, %v289_v47  ;;  %v344_v16 = vmul.f32 -0.75, %v336_v9  ;;  %v345_v18 = vmul.f32 -0.75, %v337_v10 }
  0x44   : > { %v338_v22 = vmul.f32 -0.25, %v330_v3  ;;  %v339_v24 = vmul.f32 -0.25, %v331_v11  ;;  %vm402_vm0 = vcmask 0  }
  0x45   : > { %v340_v17 = vmul.f32 -0.25, %v332_v14  ;;  %v341_v25 = vmul.f32 -0.25, %v333_v15 }
  0x46   : > { %v346_v26 = vsel %vm218_vm8, %v338_v22, %v342_v12  ;;  %v347_v27 = vsel %vm219_vm9, %v339_v24, %v343_v13 }
  0x47   : > { %v348_v38 = vsel %vm220_vm10, %v340_v17, %v344_v16  ;;  %v349_v59 = vsel %vm221_vm11, %v341_v25, %v345_v18  ;;  %v366_v19 = vsel %vm362_vm12, %v346_v26, 0.0  ;;  %v367_v62 = vsel %vm363_vm13, %v347_v27, 0.0 }
  0x48   : > { %v368_v39 = vsel %vm364_vm14, %v348_v38, 0.0  ;;  %v389_v28 = vadd.f32 %v367_v62, %v366_v19  ;;  %v369_v29 = vsel %vm365_vm15, %v349_v59, 0.0 }
  0x4a   : > { %v390_v30 = vadd.f32 %v389_v28, %v368_v39 }
  0x4c   : > { %v391_v40 = vadd.f32 %v390_v30, %v369_v29 }
  0x4e   : > { %392 = vadd.xlane.f32.xlu0 %v391_v40 }
  0xd7   : > { %v393_v31 = vpop.xlane.xlu0 %392 }
  0xd8   : > { %v394_v63 = vrot.slane %v393_v31, 4 }
  0xda   : > { %v395_v32 = vadd.f32 %v394_v63, %v393_v31 }
  0xdc   : > { %v396_v33 = vrot.slane %v395_v32, 2 }
  0xde   : > { %v397_v42 = vadd.f32 %v396_v33, %v395_v32 }
  0xe0   : > { %v398_v34 = vrot.slane %v397_v42, 1 }
  0xe2   : > { %v399_v35 = vadd.f32 %v398_v34, %v397_v42 }
  0xe4   : > { %479 = vpush %v399_v35 }
 0x115   : > { %s480_s25 = spop %479 }
 0x116   : > { %v401_v20 = vstv %s480_s25 }
 0x117   : > { %403 = vst.msk [vmem:[%s186_s24] sm:$0x1] %vm402_vm0, %v401_v20 }
 0x118 PF: > { %s12_s11 = sadd.s32 1, %s551_s11   ;;  %s747_s9 = smov %s547_s10 }
 0x119   : > { %p9_p6 = scmp.ge.s32.totalorder %s12_s11, 4   ;;  %s748_s10 = smov %s750_s12 }
 0x11b   :  { %11 = sbr.rel (!%p9_p6) target bundleno = 2 (0x2), region = 69 }

</bundles_post_ra>
